<compile_context>
chip_gen: v6e
topology: v6e:2x2x1
jax: 0.10.0
libtpu: 0.0.40
codegen_flags: <defaults>
</compile_context>

<pallas_src>
import functools

import jax
import jax.numpy as jnp
from jax.experimental import pallas as pl
from jax.experimental.pallas import tpu as pltpu


def _round_up(n: int, m: int) -> int:
    return ((n + m - 1) // m) * m


def _mlp_kernel(x_ref, w1t_ref, w2_ref, b2_ref, o_ref, acc_ref):
    """grid = (batch tiles [parallel], D-reduction tiles [arbitrary, last])."""
    k = pl.program_id(1)

    @pl.when(k == 0)
    def _init():
        acc_ref[...] = jnp.zeros_like(acc_ref)

    # First Linear (no bias): MXU matmul with f32 accumulation (inputs may be bf16).
    acc_ref[...] += jnp.dot(
        x_ref[...], w1t_ref[...], preferred_element_type=jnp.float32
    )

    @pl.when(k == pl.num_programs(1) - 1)
    def _finalize():
        # Dropout(p=0.5) is identity in eval mode.
        h = jnp.maximum(acc_ref[...], 0.0)  # ReLU (VPU)
        # 128 -> 1 projection as VPU multiply + XLU lane reduce instead of a
        # degenerate N=1 MXU matmul (w2 is a lane-dense [1, 128] row).
        logits = jnp.sum(h * w2_ref[...], axis=-1, keepdims=True) + b2_ref[0]
        o_ref[...] = jax.nn.sigmoid(logits).astype(o_ref.dtype)


def prepare_params(w1, w2, b2, compute_dtype=jnp.bfloat16):
    """One-time conversion from PyTorch Linear layouts to kernel layouts.

    w1: [128, D] -> w1t [D, 128] in the compute dtype (bf16 halves the HBM
    weight traffic and doubles the MXU rate); w2: [1, 128] stays a lane-dense
    f32 row; b2: [1] f32. Doing transpose/cast here (once) avoids
    re-materializing D*128 weights in HBM on every forward call.
    """
    w1t = jnp.asarray(w1, jnp.float32).T.astype(compute_dtype)
    w2_row = jnp.asarray(w2, jnp.float32).reshape(1, -1)
    b2 = jnp.asarray(b2, jnp.float32).reshape(1)
    return w1t, w2_row, b2


@functools.partial(jax.jit, static_argnames=("block_b", "block_k"))
def sequential_model_forward(x, w1t, w2_row, b2, *, block_b=512, block_k=1024):
    """x: [B, D]; w1t: [D, 128]; w2_row: [1, 128]; b2: [1]  ->  [B, 1] f32."""
    assert block_b % 8 == 0 and block_k % 128 == 0
    B, D = x.shape
    H = w1t.shape[1]  # 128
    compute_dtype = w1t.dtype
    cb = jnp.dtype(compute_dtype).itemsize

    # Batch tile: single tile for small B, otherwise `block_b` rows so the x
    # stream is software-pipelined (prefetch tile i+1 while computing tile i).
    TB = _round_up(B, 8) if B <= block_b else block_b
    B_pad = _round_up(B, TB)

    # Reduction tile over D: bounds the VMEM working set for large input_dim
    # (keeps the x tile at (TB, TK) instead of (TB, D)).
    TK = D if D <= block_k else block_k
    D_pad = _round_up(D, TK)

    x = x.astype(compute_dtype)
    if (B_pad, D_pad) != (B, D):
        x = jnp.pad(x, ((0, B_pad - B), (0, D_pad - D)))
    w1t_p = w1t if D_pad == D else jnp.pad(w1t, ((0, D_pad - D), (0, 0)))

    num_b = B_pad // TB
    num_k = D_pad // TK

    # Explicit VMEM budget sized from the tiles (stays well inside v7x's 64 MiB
    # physical VMEM and v5e's smaller default scoped limit).
    vmem_need = (
        2 * TB * TK * cb      # double-buffered x tiles
        + 2 * TK * H * cb     # double-buffered W1 tiles
        + 2 * H * 4           # resident W2 row
        + 2 * TB * 4          # double-buffered output tiles
        + TB * H * 4          # f32 accumulator scratch
    )
    vmem_limit = int(min(max(4 * vmem_need, 8 * 1024 * 1024), 32 * 1024 * 1024))

    cost = pl.CostEstimate(
        flops=2 * B_pad * D_pad * H + 3 * B_pad * H,
        transcendentals=B_pad,                        # sigmoid
        bytes_accessed=(B_pad * D_pad * cb            # x stream (dominant)
                        + num_b * D_pad * H * cb      # W1 re-streamed per batch tile
                        + H * 4 + 4 + B_pad * 4),
    )

    out = pl.pallas_call(
        _mlp_kernel,
        out_shape=jax.ShapeDtypeStruct((B_pad, 1), jnp.float32),
        grid=(num_b, num_k),
        in_specs=[
            pl.BlockSpec((TB, TK), lambda i, k: (i, k)),   # x tile
            pl.BlockSpec((TK, H), lambda i, k: (k, 0)),    # W1.T tile
            pl.BlockSpec((1, H), lambda i, k: (0, 0)),     # W2 row, resident
            pl.BlockSpec(memory_space=pltpu.SMEM),         # b2 scalar
        ],
        # NOTE: the [TB, 1] output column is a lane-sparse store, but the output
        # is only B*4 bytes vs B*D*cb of input traffic, so the x stream dominates
        # for any realistic input_dim; keeping the natural layout avoids an
        # in-kernel sublane->lane relayout.
        out_specs=pl.BlockSpec((TB, 1), lambda i, k: (i, 0)),
        scratch_shapes=[pltpu.VMEM((TB, H), jnp.float32)],
        compiler_params=pltpu.CompilerParams(
            # Batch axis parallel (megacore sharding on v7x; harmless on v5e/v6e),
            # D-reduction axis arbitrary and last.
            dimension_semantics=("parallel", "arbitrary"),
            vmem_limit_bytes=vmem_limit,
        ),
        cost_estimate=cost,
    )(x, w1t_p, w2_row, b2)

    return out[:B]


def _reference(x, w1, w2, b2):
    h = jnp.maximum(x @ w1.T, 0.0)          # Dropout is identity in eval mode
    return jax.nn.sigmoid(h @ w2.T + b2)


def _make_inputs(key, B, D, H=128):
    kx, k1, k2, kb = jax.random.split(key, 4)
    x = jax.random.normal(kx, (B, D), dtype=jnp.float32)
    b1 = 1.0 / (D ** 0.5)
    w1 = jax.random.uniform(k1, (H, D), minval=-b1, maxval=b1, dtype=jnp.float32)
    b2s = 1.0 / (H ** 0.5)
    w2 = jax.random.uniform(k2, (1, H), minval=-b2s, maxval=b2s, dtype=jnp.float32)
    b2 = jax.random.uniform(kb, (1,), minval=-b2s, maxval=b2s, dtype=jnp.float32)
    return x, w1, w2, b2


if __name__ == "__main__":
    key = jax.random.PRNGKey(0)
    k_a, k_b = jax.random.split(key)

    # Small shape matching the module (input_dim=32, batch=8): single tile.
    x, w1, w2, b2 = _make_inputs(k_a, B=8, D=32)
    w1t, w2_row, b2p = prepare_params(w1, w2, b2)
    out = jax.block_until_ready(sequential_model_forward(x, w1t, w2_row, b2p))
    ref = _reference(x, w1, w2, b2)
    assert out.shape == (8, 1)
    assert bool(jnp.all(jnp.isfinite(out)))
    assert jnp.allclose(out, ref, atol=1e-2, rtol=1e-2), float(jnp.max(jnp.abs(out - ref)))

    # Exercise the tiled path (batch grid + D-reduction grid + padding) at a
    # still-small shape by shrinking the block sizes.
    x2, w1_2, w2_2, b2_2 = _make_inputs(k_b, B=136, D=320)
    w1t2, w2r2, b2p2 = prepare_params(w1_2, w2_2, b2_2)
    out2 = jax.block_until_ready(
        sequential_model_forward(x2, w1t2, w2r2, b2p2, block_b=64, block_k=128)
    )
    ref2 = _reference(x2, w1_2, w2_2, b2_2)
    assert out2.shape == (136, 1)
    assert jnp.allclose(out2, ref2, atol=1e-2, rtol=1e-2), float(jnp.max(jnp.abs(out2 - ref2)))

    print("KERNEL_OK")
</pallas_src>

<mosaic_0001>
module attributes {stable_mosaic.version = 11 : i64} {
  func.func @_mlp_kernel(%arg0: i32, %arg1: i32, %arg2: memref<8x32xbf16, #tpu.memory_space<vmem>>, %arg3: memref<32x128xbf16, #tpu.memory_space<vmem>>, %arg4: memref<1x128xf32, #tpu.memory_space<vmem>>, %arg5: memref<1xf32, #tpu.memory_space<smem>>, %arg6: memref<8x1xf32, #tpu.memory_space<vmem>>, %arg7: memref<8x128xf32, #tpu.memory_space<vmem>>) attributes {dimension_semantics = [#tpu.dimension_semantics<parallel>, #tpu.dimension_semantics<arbitrary>], iteration_bounds = array<i64: 1, 1>, scalar_prefetch = 0 : i64, scratch_operands = 1 : i64, tpu.core_type = #tpu.core_type<tc>, window_params = [{transform_indices = @transform_0, window_bounds = array<i64: 8, 32>}, {transform_indices = @transform_1, window_bounds = array<i64: 32, 128>}, {pipeline_mode = #tpu.pipeline_mode<synchronous>, transform_indices = @transform_2, window_bounds = array<i64: 1, 128>}, {transform_indices = @transform_3, window_bounds = array<i64: 1>}, {transform_indices = @transform_4, window_bounds = array<i64: 8, 1>}]} {
    %c0_i32 = arith.constant 0 : i32
    %0 = arith.cmpi eq, %arg1, %c0_i32 : i32
    %1 = arith.extui %0 : i1 to i32
    %c0_i32_0 = arith.constant 0 : i32
    %2 = arith.cmpi ne, %1, %c0_i32_0 : i32
    scf.if %2 {
      %cst_10 = arith.constant 0.000000e+00 : f32
      %12 = vector.broadcast %cst_10 : f32 to vector<8x128xf32>
      %c0_11 = arith.constant 0 : index
      %c0_12 = arith.constant 0 : index
      %13 = vector.load %arg7[%c0_11, %c0_12] : memref<8x128xf32, #tpu.memory_space<vmem>>, vector<8x128xf32>
      tpu.vector_store %arg7[%c0_11, %c0_12], %12 {strides = array<i32>} : memref<8x128xf32, #tpu.memory_space<vmem>>, vector<8x128xf32>,
    } else {
    }
    %c0 = arith.constant 0 : index
    %c0_1 = arith.constant 0 : index
    %3 = vector.load %arg7[%c0, %c0_1] : memref<8x128xf32, #tpu.memory_space<vmem>>, vector<8x128xf32>
    %c0_2 = arith.constant 0 : index
    %c0_3 = arith.constant 0 : index
    %4 = vector.load %arg2[%c0_2, %c0_3] : memref<8x32xbf16, #tpu.memory_space<vmem>>, vector<8x32xbf16>
    %c0_4 = arith.constant 0 : index
    %c0_5 = arith.constant 0 : index
    %5 = vector.load %arg3[%c0_4, %c0_5] : memref<32x128xbf16, #tpu.memory_space<vmem>>, vector<32x128xbf16>
    %cst = arith.constant dense<0.000000e+00> : vector<8x128xf32>
    %6 = tpu.matmul %4, %5, %cst {dimension_numbers = #tpu.dot_dimension_numbers<[1], [0], [0], [1], [0, 0, 1, 1], [], []>} : vector<8x32xbf16>, vector<32x128xbf16>, vector<8x128xf32> -> vector<8x128xf32>
    %7 = arith.addf %3, %6 : vector<8x128xf32>
    %c0_6 = arith.constant 0 : index
    %c0_7 = arith.constant 0 : index
    %8 = vector.load %arg7[%c0_6, %c0_7] : memref<8x128xf32, #tpu.memory_space<vmem>>, vector<8x128xf32>
    tpu.vector_store %arg7[%c0_6, %c0_7], %7 {strides = array<i32>} : memref<8x128xf32, #tpu.memory_space<vmem>>, vector<8x128xf32>,
    %c0_i32_8 = arith.constant 0 : i32
    %9 = arith.cmpi eq, %arg1, %c0_i32_8 : i32
    %10 = arith.extui %9 : i1 to i32
    %c0_i32_9 = arith.constant 0 : i32
    %11 = arith.cmpi ne, %10, %c0_i32_9 : i32
    scf.if %11 {
      %c0_10 = arith.constant 0 : index
      %c0_11 = arith.constant 0 : index
      %12 = vector.load %arg7[%c0_10, %c0_11] : memref<8x128xf32, #tpu.memory_space<vmem>>, vector<8x128xf32>
      %cst_12 = arith.constant 0.000000e+00 : f32
      %13 = vector.broadcast %cst_12 : f32 to vector<8x128xf32>
      %14 = arith.maximumf %12, %13 : vector<8x128xf32>
      %c0_13 = arith.constant 0 : index
      %c0_14 = arith.constant 0 : index
      %15 = vector.load %arg4[%c0_13, %c0_14] : memref<1x128xf32, #tpu.memory_space<vmem>>, vector<1x128xf32>
      %16 = vector.broadcast %15 : vector<1x128xf32> to vector<8x128xf32>
      %17 = arith.mulf %14, %16 : vector<8x128xf32>
      %cst_15 = arith.constant dense<0.000000e+00> : vector<8xf32>
      %18 = vector.multi_reduction <add>, %17, %cst_15 [1] : vector<8x128xf32> to vector<8xf32>
      %19 = vector.shape_cast %18 : vector<8xf32> to vector<8x1xf32>
      %c0_16 = arith.constant 0 : index
      %20 = memref.load %arg5[%c0_16] : memref<1xf32, #tpu.memory_space<smem>>
      %21 = vector.broadcast %20 : f32 to vector<8x1xf32>
      %22 = arith.addf %19, %21 : vector<8x1xf32>
      %23 = arith.negf %22 : vector<8x1xf32>
      %24 = math.exp %23 : vector<8x1xf32>
      %cst_17 = arith.constant 1.000000e+00 : f32
      %25 = vector.broadcast %cst_17 : f32 to vector<8x1xf32>
      %26 = arith.addf %25, %24 : vector<8x1xf32>
      %27 = arith.divf %25, %26 : vector<8x1xf32>
      %c0_18 = arith.constant 0 : index
      %c0_19 = arith.constant 0 : index
      %28 = vector.load %arg6[%c0_18, %c0_19] : memref<8x1xf32, #tpu.memory_space<vmem>>, vector<8x1xf32>
      tpu.vector_store %arg6[%c0_18, %c0_19], %27 {strides = array<i32>} : memref<8x1xf32, #tpu.memory_space<vmem>>, vector<8x1xf32>,
    } else {
    }
    return
  }
  func.func @transform_0(%arg0: i32, %arg1: i32) -> (i32, i32) {
    %c0_i32 = arith.constant 0 : i32
    return %arg0, %arg1 : i32, i32
  }
  func.func @transform_1(%arg0: i32, %arg1: i32) -> (i32, i32) {
    %c0_i32 = arith.constant 0 : i32
    %c0_i32_0 = arith.constant 0 : i32
    return %arg1, %c0_i32 : i32, i32
  }
  func.func @transform_2(%arg0: i32, %arg1: i32) -> (i32, i32) {
    %c0_i32 = arith.constant 0 : i32
    %c0_i32_0 = arith.constant 0 : i32
    %c0_i32_1 = arith.constant 0 : i32
    return %c0_i32, %c0_i32_0 : i32, i32
  }
  func.func @transform_3(%arg0: i32, %arg1: i32) -> i32 {
    %c0_i32 = arith.constant 0 : i32
    %c0_i32_0 = arith.constant 0 : i32
    return %c0_i32 : i32
  }
  func.func @transform_4(%arg0: i32, %arg1: i32) -> (i32, i32) {
    %c0_i32 = arith.constant 0 : i32
    %c0_i32_0 = arith.constant 0 : i32
    return %arg0, %c0_i32 : i32, i32
  }
}

</mosaic_0001>

<bundles_post_ra>
// kernel: sequential_model_forward.1
= control target key start
LH: loop header
LB: loop body
LE: loop exit
PB: predicated region body
PF: predicated region fallthrough
CT: control target
= control target key end

     0   :  { %10 = vsyncpa [#allocation5], 0  ;;  %s182_s15 = smov [#allocation4]   ;;  %s227_s0 = inlined_call_operand.vmem [shape: bf16[8,32], index: 0, kind: input, shape index: {}]   ;;  %s228_s1 = inlined_call_operand.hbm [shape: bf16[32,128], index: 1, kind: input, shape index: {}]   ;;  %s229_s2 = inlined_call_operand.vmem [shape: f32[1,128], index: 2, kind: input, shape index: {}]   ;;  %s230_s3 = inlined_call_operand.<no memory space> [shape: f32[1], index: 3, kind: input, shape index: {}]   ;;  %s231_s4 = inlined_call_operand.vmem [shape: f32[8,1], index: 4, kind: output, shape index: {}]  }
   0x1   :  { %s18_s16 = sshll.u32 %s182_s15, 4  ;;  %s19_s16 = int_to_ptr.vmem [resolvable:$true] %s18_s16 }
   0x2   :  { %s168_s17 = scalar_lea.vmem %s19_s16, 256  ;;  %p173_p1 = scmp.lt.s32.totalorder %s19_s16, %s19_s16 }
   0x3   :  { %p169_p0 = scmp.ne.s32.totalorder %s19_s16, %s168_s17  ;;  %p174_p2 = scmp.lt.s32.totalorder %s168_s17, %s168_s17 }
   0x5   :  { %p175_p3 = por %p174_p2, %p173_p1 }
   0x7   :  { %p176_p4 = pnand %p175_p3, %p169_p0 }
   0x9   :  { %179 = shalt.err (!%p176_p4)
}
   0xa   :  { %s183_s18 = smov 64   ;;  %s184_s19 = smov 4  }
   0xb   :  { %24 = dma.hbm_to_vmem [thread:$0]  %s228_s1, 256, %s19_s16, [#allocation5], %s183_s18, %s183_s18, %s184_s19  }
   0xc   :  { %180 = dma.done.wait [#allocation5], 256  }
   0xd   :  { %181 = vsyncadd [#allocation5], 4294967040  ;;  %v185_v0 = vmov 0.0   ;;  %vm186_vm0 = vmmov 0   ;;  %v154_v1 = vld [vmem:[#allocation4 + $0x8] sm:$0xff]   ;;  %v155_v2 = vld [vmem:[#allocation4] sm:$0xff]   ;;  %v118_v11 = vstv %s230_s3 }
   0xe   :  { %141 = vmatprep.subr.bf16.mxu0 %v185_v0  ;;  %145 = vmatprep.mubr.msk.bf16.mxu0 %vm186_vm0, %v185_v0  ;;  %v39_v3 = vld [vmem:[%s227_s0] sm:$0xf]  ;;  %vm56_vm1 = vcmask 261120   ;;  %vm126_vm2 = vcmask 7168  }
   0xf   :  { %142 = vmatpush3.bf16.msra.mxu0 %v154_v1  ;;  %v136_v5 = vld [vmem:[%s229_s2] ss:$0 sm:$0xff] }
  0x10   :  { %143 = vmatprep.subr.bf16.mxu0 %v185_v0 }
  0x13   :  { %144 = vmatpush3.bf16.msra.mxu0 %v155_v2 }
  0x16   :  { %146 = vmatmul.mubr.msk.bf16.vlgmr.msra.gmra.mxu0 %vm56_vm1, %v39_v3 }
  0xd6   :  { %v94_v4 = vpop.f32.mrf.mxu0 }
  0xd7   :  { %v106_v6 = vmax.f32 %v94_v4, 0.0 }
  0xd8   :  { %v147_v7 = vpop.f32.mrf.mxu0 }
  0xd9   :  { %v114_v8 = vmul.f32 %v136_v5, %v106_v6 }
  0xda   :  { %v97_v9 = vpop.f32.mrf.mxu0 }
  0xdb   :  { %115 = vadd.xlane.f32.xlu0 %v114_v8 }
  0xdc   :  { %v148_v10 = vpop.f32.mrf.mxu0 }
 0x164   :  { %v116_v12 = vpop.xlane.xlu0 %115 }
 0x165   :  { %v119_v13 = vadd.f32 %v118_v11, %v116_v12 }
 0x167   :  { %v137_v14 = vmul.f32 -1.442695, %v119_v13 }
 0x169   :  { %156 = vpow2.f32 %v137_v14 }
 0x176   :  { %v157_v15 = vpop.eup %156 }
 0x177   :  { %v123_v16 = vadd.f32 1.0, %v157_v15 }
 0x179   :  { %158 = vrcp.f32 %v123_v16 }
 0x186   :  { %v159_v17 = vpop.eup %158 }
 0x187   :  { %127 = vst.msk [vmem:[%s231_s4] sm:$0xff] %vm126_vm2, %v159_v17 }
 0x188   :  { %132 = vsyncpa [#allocation5], 1 }

</bundles_post_ra>
